<compile_context>
chip_gen: v7x
topology: tpu7x:2x2x1
jax: 0.10.0
libtpu: 0.0.40
codegen_flags: <defaults>
</compile_context>

<pallas_src>
import jax
import jax.numpy as jnp
from jax.experimental import pallas as pl
from jax.experimental.pallas import tpu as pltpu


_MIN_TOTAL_BLOCKS = 8                      # keep the pipeline + both v7x TCs fed
_DEFAULT_BLOCK_BUDGET = 4 * 1024 * 1024    # bytes per input block (per review)


def _dice_partial_kernel(pre_ref, tar_ref, out_ref):
    """Reduce one (rows, bf) block to packed (intersection, union) partials.

    out_ref block is (1, 1, 2, 128): sublane 0 = intersection partial
    (broadcast across lanes), sublane 1 = union partial.
    """
    p = pre_ref[...].astype(jnp.float32)
    t = tar_ref[...].astype(jnp.float32)
    inter = jnp.sum(p * t)
    union = jnp.sum(p + t)            # one reduction tree instead of two
    sub = jax.lax.broadcasted_iota(jnp.int32, out_ref.shape,
                                   len(out_ref.shape) - 2)
    out_ref[...] = jnp.where(sub == 0, inter, union)


def _sublane_unit(dtype):
    """VMEM sublane-tile height: 8 for 4-byte, 16 for 2-byte, 32 for 1-byte."""
    return 32 // jnp.dtype(dtype).itemsize


def _pick_block_feat(feat, rows_padded, itemsize, budget_bytes, nr,
                     min_total_blocks):
    """Largest feature-block width (multiple of 128, divisor of `feat`) whose
    (rows_padded x bf) block fits `budget_bytes` while still leaving at least
    `min_total_blocks` total grid steps.  If that floor is unreachable, fall
    back to bf=128 so the step count is maximised instead."""
    assert feat % 128 == 0
    g = feat // 128
    for d in range(g, 0, -1):
        if g % d:
            continue
        bf = 128 * d
        if rows_padded * bf * itemsize > budget_bytes:
            continue
        if nr * (g // d) >= min_total_blocks:
            return bf
    return 128


def dice_loss(predict, target, *, epsilon=1.0,
              block_budget_bytes=_DEFAULT_BLOCK_BUDGET):
    predict = jnp.asarray(predict)
    target = jnp.asarray(target)

    # --- PyTorch-equivalent shape handling (plain-JAX glue; the common path
    #     makes no extra HBM copies) ---
    chan_offset_elems = 0
    if predict.ndim == 4 and predict.shape[1] == 2:
        n, c, h, w = predict.shape
        hw = h * w
        assert (n, h, w) == tuple(target.shape), (
            f"the size of predict and target must be equal, but got predict "
            f"size is {(n, h, w)}, target size is {tuple(target.shape)}"
        )
        if hw % 128 == 0:
            # Channel 1 occupies columns [hw, 2*hw) of the free (n, c*hw)
            # reshape; selected inside the kernel via the index_map offset.
            pre = predict.reshape(n, c * hw)
            chan_offset_elems = hw
        else:
            # Rare ragged fallback: materialize the slice, pad columns below.
            pre = predict[:, 1, :, :].reshape(n, hw)
        feat = hw
    else:
        assert predict.shape == target.shape, (
            f"the size of predict and target must be equal, but got predict "
            f"size is {tuple(predict.shape)}, target size is "
            f"{tuple(target.shape)}"
        )
        pre = predict.reshape(predict.shape[0], -1)
        feat = pre.shape[1]

    num = target.shape[0]
    tar = target.reshape(num, -1)

    # Keep original dtypes (upcast happens in-kernel).  bools stay at 1 byte.
    if pre.dtype == jnp.bool_:
        pre = pre.astype(jnp.int8)
    if tar.dtype == jnp.bool_:
        tar = tar.astype(jnp.int8)

    # Ragged feature tail: zero-pad to a lane multiple (preserves both sums;
    # never taken on the channel-offset path).
    if feat % 128 != 0:
        pad = 128 - feat % 128
        pre = jnp.pad(pre, ((0, 0), (0, pad)))
        tar = jnp.pad(tar, ((0, 0), (0, pad)))
        feat += pad

    itemsize = max(pre.dtype.itemsize, tar.dtype.itemsize)
    row_unit = max(_sublane_unit(pre.dtype), _sublane_unit(tar.dtype))

    # Row (batch) tiling: only needed when a full-batch 128-lane column block
    # would blow the per-block budget.  Zero row-padding preserves both sums.
    if num * 128 * itemsize <= block_budget_bytes:
        rt, nr, rows = num, 1, num
    else:
        rt = max((block_budget_bytes // (128 * itemsize)) // row_unit * row_unit,
                 row_unit)
        rows = -(-num // rt) * rt
        if rows != num:
            pre = jnp.pad(pre, ((0, rows - num), (0, 0)))
            tar = jnp.pad(tar, ((0, rows - num), (0, 0)))
        nr = rows // rt

    rt_padded = -(-rt // row_unit) * row_unit   # sublane-padded VMEM footprint
    bf = _pick_block_feat(feat, rt_padded, itemsize, block_budget_bytes, nr,
                          _MIN_TOTAL_BLOCKS)
    nf = feat // bf
    off_blocks = chan_offset_elems // bf   # exact: bf divides hw on that path

    # Scoped-VMEM limit: covers 2 inputs x 2 pipeline buffers x block budget
    # with headroom; stays within physical VMEM on all generations.
    vmem_limit_bytes = min(max(32 << 20, 4 * block_budget_bytes + (2 << 20)),
                           64 << 20)

    out = pl.pallas_call(
        _dice_partial_kernel,
        out_shape=jax.ShapeDtypeStruct((nr, nf, 2, 128), jnp.float32),
        grid_spec=pltpu.PrefetchScalarGridSpec(
            num_scalar_prefetch=0,
            grid=(nr, nf),
            in_specs=[
                pl.BlockSpec((rt, bf), lambda r, f: (r, off_blocks + f)),
                pl.BlockSpec((rt, bf), lambda r, f: (r, f)),
            ],
            out_specs=pl.BlockSpec((1, 1, 2, 128), lambda r, f: (r, f, 0, 0)),
        ),
        # Every grid step is an independent partial reduction.
        # TODO(synk): on v7x, evaluate pltpu.CORE_PARALLEL on the block axis
        # if plain "parallel" does not shard the grid across both TensorCores.
        compiler_params=pltpu.CompilerParams(
            dimension_semantics=("parallel", "parallel"),
            vmem_limit_bytes=vmem_limit_bytes,
        ),
        cost_estimate=pl.CostEstimate(
            flops=3 * rows * feat,
            transcendentals=0,
            bytes_accessed=rows * feat * (pre.dtype.itemsize
                                          + tar.dtype.itemsize)
            + nr * nf * 2 * 128 * 4,
        ),
    )(pre, tar)

    intersection = jnp.sum(out[:, :, 0, 0])
    union = jnp.sum(out[:, :, 1, 0])
    eps = jnp.float32(epsilon)
    return 1.0 - 2.0 * (intersection + eps) / (union + eps)


def _ref_dice_loss(predict, target, epsilon=1.0):
    """Pure-JAX reference mirroring the PyTorch module."""
    if predict.ndim == 4 and predict.shape[1] == 2:
        predict = predict[:, 1, :, :]
    num = predict.shape[0]
    pre = predict.reshape(num, -1).astype(jnp.float32)
    tar = target.reshape(num, -1).astype(jnp.float32)
    intersection = (pre * tar).sum(-1).sum()
    union = (pre + tar).sum(-1).sum()
    return 1.0 - 2.0 * (intersection + epsilon) / (union + epsilon)


if __name__ == "__main__":
    key = jax.random.PRNGKey(0)
    k1, k2 = jax.random.split(key)

    # predict: NCHW with C=2 (module selects channel 1); target: NHW
    predict = jax.nn.sigmoid(
        jax.random.normal(k1, (2, 2, 16, 16), dtype=jnp.float32))
    target_f32 = (jax.random.uniform(k2, (2, 16, 16)) > 0.5).astype(jnp.float32)

    out = jax.block_until_ready(dice_loss(predict, target_f32))
    ref = _ref_dice_loss(predict, target_f32)
    assert jnp.allclose(out, ref, atol=1e-5, rtol=1e-5), (out, ref)

    # bool target path (kept at 1 byte in HBM, upcast to f32 in-kernel)
    target_bool = jax.random.uniform(k2, (2, 16, 16)) > 0.5
    out_b = jax.block_until_ready(dice_loss(predict, target_bool))
    ref_b = _ref_dice_loss(predict, target_bool)
    assert jnp.allclose(out_b, ref_b, atol=1e-5, rtol=1e-5), (out_b, ref_b)

    # plain NHW predict path (no channel selection)
    out_p = jax.block_until_ready(dice_loss(predict[:, 1], target_f32))
    ref_p = _ref_dice_loss(predict[:, 1], target_f32)
    assert jnp.allclose(out_p, ref_p, atol=1e-5, rtol=1e-5), (out_p, ref_p)

    print("KERNEL_OK")
</pallas_src>

<mosaic_0001>
module attributes {stable_mosaic.version = 11 : i64} {
  func.func @_dice_partial_kernel(%arg0: i32, %arg1: i32, %arg2: memref<2x128xf32, #tpu.memory_space<vmem>>, %arg3: memref<2x128xf32, #tpu.memory_space<vmem>>, %arg4: memref<1x1x2x128xf32, #tpu.memory_space<vmem>>) attributes {dimension_semantics = [#tpu.dimension_semantics<parallel>, #tpu.dimension_semantics<parallel>], iteration_bounds = array<i64: 1, 2>, scalar_prefetch = 0 : i64, scratch_operands = 0 : i64, tpu.core_type = #tpu.core_type<tc>, window_params = [{transform_indices = @transform_0, window_bounds = array<i64: 2, 128>}, {transform_indices = @transform_1, window_bounds = array<i64: 2, 128>}, {transform_indices = @transform_2, window_bounds = array<i64: 1, 1, 2, 128>}]} {
    %c0 = arith.constant 0 : index
    %c0_0 = arith.constant 0 : index
    %0 = vector.load %arg2[%c0, %c0_0] : memref<2x128xf32, #tpu.memory_space<vmem>>, vector<2x128xf32>
    %c0_1 = arith.constant 0 : index
    %c0_2 = arith.constant 0 : index
    %1 = vector.load %arg3[%c0_1, %c0_2] : memref<2x128xf32, #tpu.memory_space<vmem>>, vector<2x128xf32>
    %2 = arith.mulf %0, %1 : vector<2x128xf32>
    %3 = vector.shape_cast %2 : vector<2x128xf32> to vector<1x2x128xf32>
    %cst = arith.constant dense<0.000000e+00> : vector<1xf32>
    %4 = vector.multi_reduction <add>, %3, %cst [1, 2] : vector<1x2x128xf32> to vector<1xf32>
    %5 = vector.shape_cast %4 : vector<1xf32> to vector<1x1x1xf32>
    %6 = vector.extract %5[0, 0, 0] : f32 from vector<1x1x1xf32>
    %7 = arith.addf %0, %1 : vector<2x128xf32>
    %8 = vector.shape_cast %7 : vector<2x128xf32> to vector<1x2x128xf32>
    %cst_3 = arith.constant dense<0.000000e+00> : vector<1xf32>
    %9 = vector.multi_reduction <add>, %8, %cst_3 [1, 2] : vector<1x2x128xf32> to vector<1xf32>
    %10 = vector.shape_cast %9 : vector<1xf32> to vector<1x1x1xf32>
    %11 = vector.extract %10[0, 0, 0] : f32 from vector<1x1x1xf32>
    %12 = tpu.iota {dimensions = array<i32: 2>} : vector<1x1x2x128xi32>
    %c0_i32 = arith.constant 0 : i32
    %13 = vector.broadcast %c0_i32 : i32 to vector<1x1x2x128xi32>
    %14 = arith.cmpi eq, %12, %13 : vector<1x1x2x128xi32>
    %15 = vector.broadcast %6 : f32 to vector<1x1x2x128xf32>
    %16 = vector.broadcast %11 : f32 to vector<1x1x2x128xf32>
    %17 = arith.select %14, %15, %16 : vector<1x1x2x128xi1>, vector<1x1x2x128xf32>
    %c0_4 = arith.constant 0 : index
    %c0_5 = arith.constant 0 : index
    %c0_6 = arith.constant 0 : index
    %c0_7 = arith.constant 0 : index
    %18 = vector.load %arg4[%c0_4, %c0_5, %c0_6, %c0_7] : memref<1x1x2x128xf32, #tpu.memory_space<vmem>>, vector<1x1x2x128xf32>
    tpu.vector_store %arg4[%c0_4, %c0_5, %c0_6, %c0_7], %17 {strides = array<i32>} : memref<1x1x2x128xf32, #tpu.memory_space<vmem>>, vector<1x1x2x128xf32>,
    return
  }
  func.func @transform_0(%arg0: i32, %arg1: i32) -> (i32, i32) {
    %c2_i32 = arith.constant 2 : i32
    %0 = arith.addi %c2_i32, %arg1 : i32
    %c0_i32 = arith.constant 0 : i32
    return %arg0, %0 : i32, i32
  }
  func.func @transform_1(%arg0: i32, %arg1: i32) -> (i32, i32) {
    %c0_i32 = arith.constant 0 : i32
    return %arg0, %arg1 : i32, i32
  }
  func.func @transform_2(%arg0: i32, %arg1: i32) -> (i32, i32, i32, i32) {
    %c0_i32 = arith.constant 0 : i32
    %c0_i32_0 = arith.constant 0 : i32
    %c0_i32_1 = arith.constant 0 : i32
    return %arg0, %arg1, %c0_i32, %c0_i32_0 : i32, i32, i32, i32
  }
}

</mosaic_0001>

<bundles_post_ra>
// kernel: tpu_custom_call.1
= control target key start
LH: loop header
LB: loop body
LE: loop exit
PB: predicated region body
PF: predicated region fallthrough
CT: control target
= control target key end

     0   :  { %s968_s0 = inlined_call_operand.hbm [shape: f32[2,512], index: 0, kind: input, shape index: {}]   ;;  %s969_s1 = inlined_call_operand.hbm [shape: f32[2,256], index: 1, kind: input, shape index: {}]   ;;  %s970_s2 = inlined_call_operand.hbm [shape: f32[1,2,2,128], index: 2, kind: output, shape index: {}]  }
   0x1   :  { %977 = sst [smem:[#allocation11_spill]] %s968_s0 }
   0x2   :  { %7 = vsyncpa [#allocation3], 0 }
   0x3   :  { %9 = vsyncpa [#allocation3 + $0x1], 0 }
   0x4   :  { %10 = vsyncpa [#allocation6], 0 }
   0x5   :  { %12 = vsyncpa [#allocation6 + $0x1], 0 }
   0x6   :  { %13 = vsyncpa [#allocation4], 0 }
   0x7   :  { %15 = vsyncpa [#allocation4 + $0x1], 0  ;;  %s680_s9 = smov 0   ;;  %s682_s10 = smov 0  }
   0x8   :  { %s684_s11 = smov 0   ;;  %s686_s12 = smov 0  }
   0x9   :  { %s688_s13 = smov 0   ;;  %s690_s14 = smov 0  }
   0xa   :  { %s692_s15 = smov 0   ;;  %s694_s16 = smov 0  }
   0xb   :  { %s696_s17 = smov 0  }
   0xc LB: > { %s378_s18 = sadd.s32 4294967295, %s660_s17   ;;  %s30_s19 = sadd.s32 1, %s656_s16  ;;  %s660_s17 = sphi %s696_s17, %s21_s17   ;;  %s656_s16 = sphi %s694_s16, %s1006_s16   ;;  %s652_s15 = sphi %s692_s15, %s1005_s15   ;;  %s648_s14 = sphi %s690_s14, %s1004_s14   ;;  %s644_s13 = sphi %s688_s13, %s1003_s13   ;;  %s640_s12 = sphi %s686_s12, %s1002_s12   ;;  %s636_s11 = sphi %s684_s11, %s1001_s11   ;;  %s632_s10 = sphi %s682_s10, %s1000_s10   ;;  %s628_s9 = sphi %s680_s9, %s999_s9  }
   0xd   : > { %p31_p0 = scmp.ge.s32.totalorder %s30_s19, 2  ;;  %s37_s20 = sadd.s32 2, %s656_s16 }
   0xe   : > { %s44_s21 = sadd.s32 1, %s648_s14  ;;  %p51_p1 = scmp.ne.s32.totalorder %s648_s14, %s644_s13 }
   0xf   : > { %s1008_s19 = smov (%p31_p0, %s30_s19), 0  ;;  %p972_p2 = scmp.eq.s32.totalorder %s660_s17, 0 }
  0x10   : > { %p57_p3 = scmp.ne.s32.totalorder %s644_s13, %s640_s12  ;;  %s38_s22 = sadd.s32 2, %s1008_s19 }
  0x11   : > { %p736_p4 = scmp.eq.s32.totalorder %s378_s18, 0  ;;  %s40_s24 = ssub.s32 %s37_s20, %s38_s22 }
  0x12   : > { %p742_p5 = por %p972_p2, %p51_p1  ;;  %p42_p6 = scmp.eq.s32.totalorder %s40_s24, 0 }
  0x13   : > { %s978_s23 = scalar_select %p736_p4, 1, 0 }
  0x14   : > { %p748_p7 = por %p736_p4, %p57_p3  ;;  %s68_s27 = ssub.s32 %s656_s16, %s1008_s19 }
  0x15   : > { %s756_s28 = scalar_select %p42_p6, %s648_s14, %s44_s21  }
  0x16   : > { %s980_s26 = scalar_select %p748_p7, 1, 0 }
  0x17   : > { %p758_p9 = scmp.eq.s32.totalorder %s68_s27, 0  ;;  %p971_p10 = scmp.lt.s32.totalorder %s660_s17, 2 }
  0x18   : > { %s137_s30 = sand.u32 1, %s648_s14   ;;  %s383_s3 = sshll.u32 %s656_s16, 5 }
  0x19   : > { %s382_s4 = sshll.u32 %s137_s30, 1  ;;  %s982_s0 = sld [smem:[#allocation11_spill]] }
  0x1a   : > { %s141_s12 = scalar_lea.vmem [#allocation2], %s382_s4  ;;  %p778_p11 = pnand %p971_p10, %p742_p5 }
  0x1b   : > { %s151_s20 = sshll.u32 %s141_s12, 4  ;;  %s138_s22 = scalar_lea.sflag [#allocation3], %s137_s30  ;;  %s772_s20 = int_to_ptr.vmem [resolvable:$true] %s151_s20 }
  0x1c   : > { %p491_p1 = pneg %p778_p11 }
  0x1f   : > { %s303_s7 = scalar_lea.hbm %s982_s0, %s383_s3  ;;  %s494_s4 = scalar_lea.hbm %s982_s0, 128 }
  0x20   : > { %s770_s8 = scalar_lea.hbm %s303_s7, 64  ;;  %s519_s24 = scalar_lea.hbm %s303_s7, 96 }
  0x21   : > { %p490_p0 = scmp.ne.s32.totalorder %s770_s8, %s519_s24  ;;  %p495_p5 = scmp.lt.u32.totalorder %s770_s8, %s982_s0 }
  0x22   : > { %p496_p8 = scmp.lt.u32.totalorder %s494_s4, %s519_s24  ;;  %p498_p2 = scmp.lt.u32.totalorder %s519_s24, %s770_s8 }
  0x23   : > { %p492_p3 = pnand %p491_p1, %p490_p0 }
  0x24   : > { %p497_p10 = por %p496_p8, %p495_p5 }
  0x25   : > { %p493_p6 = pneg %p492_p3 }
  0x26   : > { %p499_p12 = por %p498_p2, %p497_p10 }
  0x28   : > { %p500_p13 = pnand %p499_p12, %p493_p6 }
  0x2a   : > { %503 = shalt.err (!%p500_p13)
}
  0x2b   : > { %s504_s30 = scalar_lea.vmem %s772_s20, 32  ;;  %s662_s7 = smov [#allocation2]  }
  0x2c   : > { %p505_p0 = scmp.ne.s32.totalorder %s772_s20, %s504_s30  ;;  %s509_s12 = sshll.u32 %s662_s7, 4  ;;  %s510_s12 = int_to_ptr.vmem [resolvable:$false] %s509_s12 }
  0x2d   : > { %s511_s27 = scalar_lea.vmem %s510_s12, 64  ;;  %p512_p4 = scmp.lt.s32.totalorder %s772_s20, %s510_s12 }
  0x2e   : > { %p507_p3 = pnand %p505_p0, %p491_p1  ;;  %p513_p8 = scmp.lt.s32.totalorder %s511_s27, %s504_s30 }
  0x30   : > { %p508_p7 = pneg %p507_p3  ;;  %p514_p5 = por %p513_p8, %p512_p4 }
  0x32   : > { %p515_p2 = pnand %p514_p5, %p508_p7 }
  0x34   : > { %518 = shalt.err (!%p515_p2)
}
  0x35   : > { %407 = dma.hbm_to_vmem [thread:$0]  (!%p778_p11), %s770_s8, 32, %s772_s20, %s138_s22  }
  0x36   : > { %p984_p4 = scmp.lt.s32.totalorder %s660_s17, 3  ;;  %p985_p7 = scmp.ge.s32.totalorder %s660_s17, 1 }
  0x37   : > { %s379_s24 = sadd.s32 4294967294, %s660_s17   ;;  %s72_s25 = sadd.s32 1, %s636_s11 }
  0x38   : > { %p812_p10 = pnand %p985_p7, %p984_p4  ;;  %p79_p12 = scmp.ne.s32.totalorder %s636_s11, %s632_s10 }
  0x39   : > { %s821_s4 = scalar_select %p758_p9, %s636_s11, %s72_s25  }
  0x3a   : > { %p85_p13 = scmp.ne.s32.totalorder %s632_s10, %s628_s9  ;;  %p111_p1 = scmp.eq.s32.totalorder %s378_s18, 1 }
  0x3b   : > { %p117_p6 = scmp.eq.s32.totalorder %s379_s24, 1  ;;  %p987_p0 = scmp.eq.s32.totalorder %s660_s17, 0 }
  0x3c   : > { %p988_p11 = scmp.ne.s32.totalorder %s978_s23, 0  ;;  %p837_p5 = por %p111_p1, %p79_p12 }
  0x3d   : > { %p81_p3 = por %p79_p12, %p987_p0  ;;  %p841_p2 = por %p117_p6, %p85_p13 }
  0x3e   : > { %p833_p8 = por %p85_p13, %p988_p11  ;;  %s158_s22 = sand.u32 1, %s636_s11  }
  0x3f   : > { %s990_s20 = scalar_select %p837_p5, 1, 0 }
  0x40   : > { %s989_s8 = scalar_select %p833_p8, 1, 0 }
  0x41   : > { %s991_s29 = scalar_select %p841_p2, 1, 0 }
  0x42   : > { %s851_s6 = scalar_lea.hbm %s969_s1, %s383_s3  ;;  %s384_s23 = sshll.u32 %s158_s22, 1 }
  0x43   : > { %p992_p9 = scmp.lt.s32.totalorder %s660_s17, 2  ;;  %s162_s7 = scalar_lea.vmem [#allocation5], %s384_s23 }
  0x44   : > { %s171_s12 = sshll.u32 %s162_s7, 4  ;;  %s159_s27 = scalar_lea.sflag [#allocation6], %s158_s22  ;;  %s859_s12 = int_to_ptr.vmem [resolvable:$true] %s171_s12 }
  0x45   : > { %p855_p4 = pnand %p992_p9, %p81_p3  ;;  %s520_s24 = scalar_lea.hbm %s851_s6, 32 }
  0x46   : > { %p521_p7 = scmp.ne.s32.totalorder %s851_s6, %s520_s24  ;;  %s525_s5 = scalar_lea.hbm %s969_s1, 64 }
  0x47   : > { %p522_p12 = pneg %p855_p4  ;;  %p526_p6 = scmp.lt.u32.totalorder %s851_s6, %s969_s1 }
  0x48   : > { %p527_p0 = scmp.lt.u32.totalorder %s525_s5, %s520_s24  ;;  %p529_p11 = scmp.lt.u32.totalorder %s520_s24, %s851_s6 }
  0x49   : > { %p523_p13 = pnand %p522_p12, %p521_p7 }
  0x4a   : > { %p528_p3 = por %p527_p0, %p526_p6 }
  0x4b   : > { %p524_p1 = pneg %p523_p13 }
  0x4c   : > { %p530_p9 = por %p529_p11, %p528_p3 }
  0x4e   : > { %p531_p2 = pnand %p530_p9, %p524_p1 }
  0x50   : > { %534 = shalt.err (!%p531_p2)
}
  0x51   : > { %s535_s22 = scalar_lea.vmem %s859_s12, 32  ;;  %s663_s23 = smov [#allocation5]  }
  0x52   : > { %p536_p7 = scmp.ne.s32.totalorder %s859_s12, %s535_s22  ;;  %s540_s7 = sshll.u32 %s663_s23, 4  ;;  %s541_s7 = int_to_ptr.vmem [resolvable:$false] %s540_s7 }
  0x53   : > { %s542_s0 = scalar_lea.vmem %s541_s7, 64  ;;  %p543_p8 = scmp.lt.s32.totalorder %s859_s12, %s541_s7 }
  0x54   : > { %p538_p13 = pnand %p536_p7, %p522_p12  ;;  %p544_p6 = scmp.lt.s32.totalorder %s542_s0, %s535_s22 }
  0x56   : > { %p539_p5 = pneg %p538_p13  ;;  %p545_p0 = por %p544_p6, %p543_p8 }
  0x58   : > { %p546_p3 = pnand %p545_p0, %p539_p5 }
  0x5a   : > { %549 = shalt.err (!%p546_p3)
}
  0x5b   : > { %410 = dma.hbm_to_vmem [thread:$0]  (!%p855_p4), %s851_s6, 32, %s859_s12, %s159_s27  }
  0x5c   : > { %180 = sbr.rel (%p812_p10) target bundleno = 332 (0x14c), region = 28  ;;  %s182_s24 = sand.u32 (!%p812_p10), 1, %s644_s13  }
  0x5d   : > { %s387_s3 = sshll.u32 (!%p812_p10), %s182_s24, 1  ;;  %s183_s25 = scalar_lea.sflag (!%p812_p10), [#allocation3], %s182_s24 }
  0x5e   : > { %s186_s5 = scalar_lea.vmem (!%p812_p10), [#allocation2], %s387_s3  ;;  %p994_p2 = scmp.ne.s32.totalorder (!%p812_p10), %s980_s26, 0 }
  0x63   : > { %615 = dma.done.wait (%p994_p2), %s183_s25, 32  }
  0x64   : > { %617 = vsyncadd (%p994_p2), %s183_s25, 4294967264  ;;  %s894_s30 = sand.u32 1, %s632_s10   ;;  %p995_p10 = scmp.ne.s32.totalorder %s989_s8, 0 }
  0x65   : > { %s388_s21 = sshll.u32 %s894_s30, 1  ;;  %s192_s6 = scalar_lea.sflag [#allocation6], %s894_s30 }
  0x66   : > { %s195_s12 = scalar_lea.vmem [#allocation5], %s388_s21 }
  0x67   : > { %619 = dma.done.wait (%p995_p10), %s192_s6, 32  }
  0x68   : > { %621 = vsyncadd (%p995_p10), %s192_s6, 4294967264  ;;  %v222_v0 = vld [vmem:[%s186_s5] sm:$0x3]  ;;  %v223_v1 = vld [vmem:[%s195_s12] sm:$0x3]  ;;  %vm225_vm0 = vcmask 1041408   ;;  %v247_v20 = vlaneseq }
  0x69   : > { %v224_v2 = vmul.f32 %v223_v1, %v222_v0  ;;  %v236_v3 = vadd.f32 %v223_v1, %v222_v0  ;;  %s391_s26 = sshll.u32 %s652_s15, 5  ;;  %s220_s27 = scalar_lea.vmem [#allocation7], %s388_s21 }
  0x6a   : > { %v248_v21 = vshrl.u32 %v247_v20, 7  ;;  %s270_s18 = sshll.u32 %s220_s27, 4  ;;  %s910_s0 = scalar_lea.hbm %s970_s2, %s391_s26  ;;  %s912_s18 = int_to_ptr.vmem [resolvable:$true] %s270_s18 }
  0x6b   : > { %v226_v4 = vsel %vm225_vm0, %v224_v2, 0.0  ;;  %v237_v5 = vsel %vm225_vm0, %v236_v3, 0.0  ;;  %s255_s15 = scalar_lea.sflag [#allocation4], %s894_s30  ;;  %s550_s24 = scalar_lea.vmem %s912_s18, 32 }
  0x6c   : > { %227 = vadd.xlane.f32.xlu0 %v226_v4  ;;  %vm249_vm1 = vcmp.eq.s32.totalorder %v248_v21, 0  ;;  %p551_p8 = scmp.ne.s32.totalorder %s912_s18, %s550_s24  ;;  %p996_p5 = scmp.ne.s32.totalorder %s990_s20, 0 }
  0x6d   : > { %s664_s3 = smov [#allocation7]  }
  0x6e   : > { %p552_p4 = pnand %p551_p8, %p996_p5  ;;  %s554_s25 = sshll.u32 %s664_s3, 4  ;;  %s555_s25 = int_to_ptr.vmem [resolvable:$false] %s554_s25 }
  0x6f   : > { %s556_s5 = scalar_lea.vmem %s555_s25, 64  ;;  %p557_p1 = scmp.lt.s32.totalorder %s912_s18, %s555_s25 }
  0x70   : > { %238 = vadd.xlane.f32.xlu0 %v237_v5  ;;  %p553_p12 = pneg %p552_p4  ;;  %p558_p11 = scmp.lt.s32.totalorder %s556_s5, %s550_s24 }
  0x72   : > { %p559_p9 = por %p558_p11, %p557_p1 }
  0x74   : > { %p560_p7 = pnand %p559_p9, %p553_p12 }
  0xf9   : > { %v228_v6 = vpop.xlane.xlu0 %227 }
  0xfa   : > { %v229_v7 = vrot.slane %v228_v6, 4 }
  0xfc   : > { %v230_v8 = vadd.f32 %v229_v7, %v228_v6 }
  0xfd   : > { %v239_v9 = vpop.xlane.xlu0 %238 }
  0xfe   : > { %v231_v10 = vrot.slane %v230_v8, 2  ;;  %v240_v11 = vrot.slane %v239_v9, 4 }
 0x100   : > { %v241_v12 = vadd.f32 %v240_v11, %v239_v9  ;;  %v232_v13 = vadd.f32 %v231_v10, %v230_v8 }
 0x102   : > { %v242_v14 = vrot.slane %v241_v12, 2  ;;  %v233_v15 = vrot.slane %v232_v13, 1 }
 0x104   : > { %v243_v16 = vadd.f32 %v242_v14, %v241_v12  ;;  %v234_v17 = vadd.f32 %v233_v15, %v232_v13 }
 0x106   : > { %394 = vpush %v234_v17  ;;  %v244_v18 = vrot.slane %v243_v16, 1 }
 0x108   : > { %v245_v19 = vadd.f32 %v244_v18, %v243_v16 }
 0x10a   : > { %396 = vpush %v245_v19 }
 0x137   : > { %s395_s8 = spop %394 }
 0x138   : > { %v250_v22 = vstv %s395_s8 }
 0x13b   : > { %s397_s22 = spop %396 }
 0x13c   : > { %v251_v23 = vstv %s397_s22 }
 0x13d   : > { %v252_v24 = vsel %vm249_vm1, %v250_v22, %v251_v23 }
 0x13e   : > { %253 = vst [vmem:[%s220_s27] sm:$0x3] %v252_v24 }
 0x13f   : > { %563 = shalt.err (!%p560_p7)
}
 0x140   : > { %s564_s30 = scalar_lea.hbm %s910_s0, 32  ;;  %s568_s12 = scalar_lea.hbm %s970_s2, 64 }
 0x141   : > { %p565_p13 = scmp.ne.s32.totalorder %s910_s0, %s564_s30  ;;  %p569_p3 = scmp.lt.u32.totalorder %s910_s0, %s970_s2 }
 0x142   : > { %p570_p2 = scmp.lt.u32.totalorder %s568_s12, %s564_s30  ;;  %p572_p8 = scmp.lt.u32.totalorder %s564_s30, %s910_s0 }
 0x143   : > { %p566_p6 = pnand %p565_p13, %p996_p5 }
 0x144   : > { %p571_p10 = por %p570_p2, %p569_p3 }
 0x145   : > { %p567_p0 = pneg %p566_p6 }
 0x146   : > { %p573_p4 = por %p572_p8, %p571_p10 }
 0x148   : > { %p574_p12 = pnand %p573_p4, %p567_p0 }
 0x14a   : > { %577 = shalt.err (!%p574_p12)
}
 0x14b   : > { %402 = dma.vmem_to_hbm [thread:$0]  (%p996_p5), %s912_s18, 32, %s910_s0, %s255_s15  }
 0x14c PF: > { %s282_s27 = sand.u32 1, %s628_s9   ;;  %p997_p1 = scmp.ne.s32.totalorder %s991_s29, 0 }
 0x14d   : > { %p998_p11 = scmp.ge.s32.totalorder %s660_s17, 2  ;;  %s283_s22 = scalar_lea.sflag [#allocation4], %s282_s27 }
 0x14f   : > { %p412_p9 = pnand %p998_p11, %p997_p1 }
 0x151   : > { %623 = dma.done.wait (!%p412_p9), %s283_s22, 32  }
 0x152   : > { %625 = vsyncadd (!%p412_p9), %s283_s22, 4294967264  ;;  %s21_s17 = sadd.s32 1, %s660_s17   ;;  %s999_s9 = smov %s632_s10 }
 0x153   : > { %p18_p7 = scmp.ge.s32.totalorder %s21_s17, 4   ;;  %s1000_s10 = smov %s636_s11 }
 0x154   : > { %s1001_s11 = smov %s821_s4  ;;  %s1002_s12 = smov %s644_s13 }
 0x155   : > { %s1003_s13 = smov %s648_s14  ;;  %s1004_s14 = smov %s756_s28 }
 0x156   : > { %s1005_s15 = smov %s656_s16  ;;  %s1006_s16 = smov %s1008_s19 }
 0x157   :  { %20 = sbr.rel (!%p18_p7) target bundleno = 12 (0xc), region = 86 }
 0x15e   :  { %288 = vsyncpa [#allocation3], 1 }
 0x15f   :  { %290 = vsyncpa [#allocation3 + $0x1], 1 }
 0x160   :  { %291 = vsyncpa [#allocation6], 1 }
 0x161   :  { %293 = vsyncpa [#allocation6 + $0x1], 1 }
 0x162   :  { %294 = vsyncpa [#allocation4], 1 }
 0x163   :  { %296 = vsyncpa [#allocation4 + $0x1], 1 }

</bundles_post_ra>
